<compile_context>
chip_gen: v6e
topology: v6e:2x2x1
jax: 0.10.0
libtpu: 0.0.40
codegen_flags: <defaults>
</compile_context>

<pallas_src>
import functools

import jax
import jax.numpy as jnp
from jax.experimental import pallas as pl
from jax.experimental.pallas import tpu as pltpu


def _biasfree_ln_kernel(x_ref, w_ref, o_ref):
    # x_ref: (1, C, T) block   w_ref: (C, 1)   o_ref: (1, C, T)
    x = x_ref[...].astype(jnp.float32)
    # Two-pass variance over the channel (sublane) axis, unbiased=False.
    mu = jnp.mean(x, axis=1, keepdims=True)              # (1, 1, T) sublane reduce
    d = x - mu
    var = jnp.mean(d * d, axis=1, keepdims=True)
    inv = jax.lax.rsqrt(var + 1e-5)
    # BiasFree: divide by std and scale by weight, NO mean subtraction of output.
    o_ref[...] = (x * inv * w_ref[...]).astype(o_ref.dtype)
    # TODO(synk): if v7x profiling shows VALU co-saturation at tiny C, move the
    # two sublane reductions onto the otherwise-idle MXU (ones(1,C) @ x).


@functools.lru_cache(maxsize=None)
def _vmem_capacity_bytes():
    """Per-core VMEM capacity; conservative (v7x) fallback if the query fails."""
    try:
        info = pltpu.get_tpu_info()
        for name in ("vmem_capacity_bytes", "vmem_size_bytes", "vmem_bytes"):
            v = getattr(info, name, None)
            if v:
                return int(v)
    except Exception:
        pass
    return 64 << 20


def _block_budget():
    """(target bytes per block, scoped vmem_limit_bytes), generation-aware."""
    vmem = _vmem_capacity_bytes()
    if vmem >= (96 << 20):          # v5e / v6e: 128 MiB VMEM
        return 12 << 20, 80 << 20   # 4 x 12 MiB double-buffered in+out = 48 MiB
    return 6 << 20, 44 << 20        # v7x: 64 MiB per TC -> 4 x 6 MiB = 24 MiB


def _sublane_padded(c, itemsize):
    """C as actually laid out in VMEM (sublane packing: f32->8, bf16->16, int8->32)."""
    pack = {4: 8, 2: 16, 1: 32}.get(itemsize, 8)
    return -(-c // pack) * pack


def _pick_tile_hw(c, hw, itemsize, batch, target_bytes, min_programs=8):
    """Largest lane tile (multiple of 128) whose block fits the byte target,
    preferring tiles that divide hw, and guaranteeing enough grid programs."""
    c_pad = _sublane_padded(c, itemsize)
    bytes_per_lane = max(1, c_pad * itemsize)
    max_tile = max(128, (target_bytes // bytes_per_lane) // 128 * 128)

    def prefer_divisor(t):
        # Nearest smaller multiple of 128 dividing hw -> no masked last block.
        for cand in range(t, max(0, t - 8 * 128), -128):
            if cand > 0 and hw % cand == 0:
                return cand
        return t

    if hw <= max_tile:
        tile = hw                      # full extent: always a legal block dim
    else:
        tile = prefer_divisor(max_tile)

    # Degenerate-grid guard: enough programs for DMA pipelining + both v7x TCs.
    n_tiles = -(-hw // tile)
    if batch * n_tiles < min_programs and hw > 128:
        want = min(max(2, -(-min_programs // max(1, batch))), max(1, hw // 128))
        t = max(128, (hw // want) // 128 * 128)
        tile = min(tile, prefer_divisor(t))
    return tile


@functools.partial(jax.jit, static_argnames=("tile_hw",))
def biasfree_layernorm_nchw(x, weight, *, tile_hw=None):
    """x: (b, c, h, w) NCHW.  weight: (c,).  LayerNorm over c.  Returns NCHW."""
    b, c, h, w = x.shape
    hw = h * w
    x3 = x.reshape(b, c, hw)                          # free view of NCHW (no transpose)
    w2 = weight.reshape(c, 1).astype(jnp.float32)

    target_bytes, vmem_limit = _block_budget()
    t = tile_hw if tile_hw is not None else _pick_tile_hw(
        c, hw, x.dtype.itemsize, b, target_bytes)
    grid = (b, pl.cdiv(hw, t))                        # no padding copy needed

    y3 = pl.pallas_call(
        _biasfree_ln_kernel,
        out_shape=jax.ShapeDtypeStruct((b, c, hw), x.dtype),
        grid_spec=pltpu.PrefetchScalarGridSpec(
            num_scalar_prefetch=0,
            grid=grid,
            in_specs=[
                pl.BlockSpec((1, c, t), lambda bi, ti: (bi, 0, ti)),
                pl.BlockSpec((c, 1), lambda bi, ti: (0, 0)),
            ],
            out_specs=pl.BlockSpec((1, c, t), lambda bi, ti: (bi, 0, ti)),
        ),
        compiler_params=pltpu.CompilerParams(
            # Both grid axes are independent -> both TCs get work on v7x megacore.
            dimension_semantics=("parallel", "parallel"),
            vmem_limit_bytes=vmem_limit,
        ),
    )(x3, w2)

    return y3.reshape(b, c, h, w)                     # free view back to NCHW


def _reference(x, weight):
    # Plain-JAX reference mirroring the PyTorch path:
    # to_3d -> BiasFree_LayerNorm (var over last dim, unbiased=False) -> to_4d.
    b, c, h, w = x.shape
    x3 = jnp.transpose(x, (0, 2, 3, 1)).reshape(b, h * w, c).astype(jnp.float32)
    var = jnp.var(x3, axis=-1, keepdims=True)
    y3 = x3 / jnp.sqrt(var + 1e-5) * weight.astype(jnp.float32)
    return jnp.transpose(y3.reshape(b, h, w, c), (0, 3, 1, 2)).astype(x.dtype)


if __name__ == "__main__":
    key = jax.random.PRNGKey(0)
    kx, kw = jax.random.split(key)

    # Small shape consistent with the module's CSCANet usage.
    b, c, h, w = 2, 4, 16, 16
    x = jax.random.normal(kx, (b, c, h, w), dtype=jnp.float32)
    # Module __init__ uses weight = ones(dim); perturb it to exercise the scale.
    weight = 1.0 + 0.1 * jax.random.normal(kw, (c,), dtype=jnp.float32)

    out = biasfree_layernorm_nchw(x, weight)
    jax.block_until_ready(out)
    ref = _reference(x, weight)
    assert out.shape == (b, c, h, w) and out.dtype == x.dtype
    assert jnp.allclose(out, ref, atol=1e-5, rtol=1e-5)

    # Second small shape exercising the multi-tile grid and the masked
    # (non-divisible) last block path via the automatic tile picker
    # (hw = 480 -> split into 128-lane tiles by the degenerate-grid guard).
    b2, c2, h2, w2 = 2, 32, 24, 20
    x2 = jax.random.normal(kx, (b2, c2, h2, w2), dtype=jnp.float32)
    weight2 = 1.0 + 0.1 * jax.random.normal(kw, (c2,), dtype=jnp.float32)
    out2 = biasfree_layernorm_nchw(x2, weight2)
    jax.block_until_ready(out2)
    ref2 = _reference(x2, weight2)
    assert jnp.allclose(out2, ref2, atol=1e-5, rtol=1e-5)

    # Explicit-tile path (forced 256-lane tiles, non-divisible last block).
    out3 = biasfree_layernorm_nchw(x2, weight2, tile_hw=256)
    jax.block_until_ready(out3)
    assert jnp.allclose(out3, ref2, atol=1e-5, rtol=1e-5)

    print("KERNEL_OK")
</pallas_src>

<mosaic_0001>
module attributes {stable_mosaic.version = 11 : i64} {
  func.func @_biasfree_ln_kernel(%arg0: i32, %arg1: i32, %arg2: memref<1x4x128xf32, #tpu.memory_space<vmem>>, %arg3: memref<4x1xf32, #tpu.memory_space<vmem>>, %arg4: memref<1x4x128xf32, #tpu.memory_space<vmem>>) attributes {dimension_semantics = [#tpu.dimension_semantics<parallel>, #tpu.dimension_semantics<parallel>], iteration_bounds = array<i64: 2, 2>, scalar_prefetch = 0 : i64, scratch_operands = 0 : i64, tpu.core_type = #tpu.core_type<tc>, window_params = [{transform_indices = @transform_0, window_bounds = array<i64: 1, 4, 128>}, {pipeline_mode = #tpu.pipeline_mode<synchronous>, transform_indices = @transform_1, window_bounds = array<i64: 4, 1>}, {transform_indices = @transform_2, window_bounds = array<i64: 1, 4, 128>}]} {
    %c0 = arith.constant 0 : index
    %c0_0 = arith.constant 0 : index
    %c0_1 = arith.constant 0 : index
    %0 = vector.load %arg2[%c0, %c0_0, %c0_1] : memref<1x4x128xf32, #tpu.memory_space<vmem>>, vector<1x4x128xf32>
    %cst = arith.constant dense<0.000000e+00> : vector<1x128xf32>
    %1 = vector.multi_reduction <add>, %0, %cst [1] : vector<1x4x128xf32> to vector<1x128xf32>
    %2 = vector.shape_cast %1 : vector<1x128xf32> to vector<1x1x128xf32>
    %cst_2 = arith.constant 4.000000e+00 : f32
    %3 = vector.broadcast %cst_2 : f32 to vector<1x1x128xf32>
    %4 = arith.divf %2, %3 : vector<1x1x128xf32>
    %5 = vector.broadcast %4 : vector<1x1x128xf32> to vector<1x4x128xf32>
    %6 = arith.subf %0, %5 : vector<1x4x128xf32>
    %7 = arith.mulf %6, %6 : vector<1x4x128xf32>
    %cst_3 = arith.constant dense<0.000000e+00> : vector<1x128xf32>
    %8 = vector.multi_reduction <add>, %7, %cst_3 [1] : vector<1x4x128xf32> to vector<1x128xf32>
    %9 = vector.shape_cast %8 : vector<1x128xf32> to vector<1x1x128xf32>
    %cst_4 = arith.constant 4.000000e+00 : f32
    %10 = vector.broadcast %cst_4 : f32 to vector<1x1x128xf32>
    %11 = arith.divf %9, %10 : vector<1x1x128xf32>
    %cst_5 = arith.constant 9.99999974E-6 : f32
    %12 = vector.broadcast %cst_5 : f32 to vector<1x1x128xf32>
    %13 = arith.addf %11, %12 : vector<1x1x128xf32>
    %14 = math.rsqrt %13 : vector<1x1x128xf32>
    %15 = vector.broadcast %14 : vector<1x1x128xf32> to vector<1x4x128xf32>
    %16 = arith.mulf %0, %15 : vector<1x4x128xf32>
    %c0_6 = arith.constant 0 : index
    %c0_7 = arith.constant 0 : index
    %17 = vector.load %arg3[%c0_6, %c0_7] : memref<4x1xf32, #tpu.memory_space<vmem>>, vector<4x1xf32>
    %18 = vector.shape_cast %17 : vector<4x1xf32> to vector<1x4x1xf32>
    %19 = vector.broadcast %18 : vector<1x4x1xf32> to vector<1x4x128xf32>
    %20 = arith.mulf %16, %19 : vector<1x4x128xf32>
    %c0_8 = arith.constant 0 : index
    %c0_9 = arith.constant 0 : index
    %c0_10 = arith.constant 0 : index
    %21 = vector.load %arg4[%c0_8, %c0_9, %c0_10] : memref<1x4x128xf32, #tpu.memory_space<vmem>>, vector<1x4x128xf32>
    tpu.vector_store %arg4[%c0_8, %c0_9, %c0_10], %20 {strides = array<i32>} : memref<1x4x128xf32, #tpu.memory_space<vmem>>, vector<1x4x128xf32>,
    return
  }
  func.func @transform_0(%arg0: i32, %arg1: i32) -> (i32, i32, i32) {
    %c0_i32 = arith.constant 0 : i32
    %c0_i32_0 = arith.constant 0 : i32
    return %arg0, %c0_i32, %arg1 : i32, i32, i32
  }
  func.func @transform_1(%arg0: i32, %arg1: i32) -> (i32, i32) {
    %c0_i32 = arith.constant 0 : i32
    %c0_i32_0 = arith.constant 0 : i32
    %c0_i32_1 = arith.constant 0 : i32
    return %c0_i32, %c0_i32_0 : i32, i32
  }
  func.func @transform_2(%arg0: i32, %arg1: i32) -> (i32, i32, i32) {
    %c0_i32 = arith.constant 0 : i32
    %c0_i32_0 = arith.constant 0 : i32
    return %arg0, %c0_i32, %arg1 : i32, i32, i32
  }
}

</mosaic_0001>

<bundles_post_ra>
// kernel: biasfree_layernorm_nchw.1
= control target key start
LH: loop header
LB: loop body
LE: loop exit
PB: predicated region body
PF: predicated region fallthrough
CT: control target
= control target key end

     0   :  { %s404_s9 = smov 0   ;;  %s406_s10 = smov 0   ;;  %s461_s0 = inlined_call_operand.vmem [shape: f32[2,4,256], index: 0, kind: input, shape index: {}]   ;;  %s462_s1 = inlined_call_operand.vmem [shape: f32[4,1], index: 1, kind: input, shape index: {}]   ;;  %s463_s2 = inlined_call_operand.vmem [shape: f32[2,4,256], index: 2, kind: output, shape index: {}]  }
   0x1   :  { %s408_s11 = smov 0   ;;  %s410_s12 = smov 0  }
   0x2   :  { %s412_s13 = smov 0  }
   0x3 LB: > { %s21_s14 = sadd.s32 1, %s378_s11  ;;  %s24_s15 = sadd.s32 1, %s382_s12  ;;  %s386_s13 = sphi %s412_s13, %s12_s13   ;;  %s382_s12 = sphi %s410_s12, %s467_s12   ;;  %s378_s11 = sphi %s408_s11, %s466_s11   ;;  %s374_s10 = sphi %s406_s10, %s465_s10   ;;  %s370_s9 = sphi %s404_s9, %s464_s9  }
   0x4   : > { %p22_p0 = scmp.ge.s32.totalorder %s21_s14, 2  ;;  %p297_p1 = scmp.ge.s32.totalorder %s386_s13, 1 }
   0x5   : > { %p131_p2 = scmp.lt.s32.totalorder %s386_s13, 5 }
   0x6   : > { %s469_s14 = smov (%p22_p0, %s21_s14), 0  ;;  %s471_s15 = smov (!%p22_p0, %s24_s15), %s382_s12 }
   0x7   : > { %p132_p3 = pnand %p297_p1, %p131_p2  ;;  %p26_p4 = scmp.ge.s32.totalorder %s471_s15, 2 }
   0x8   : > { %p159_p5 = scmp.lt.s32.totalorder (!%p132_p3), %s374_s10, 1  ;;  %p161_p6 = scmp.lt.s32.totalorder (!%p132_p3), %s370_s9, 1 }
   0x9   : > { %s473_s15 = smov (%p26_p4, %s471_s15), 0  ;;  %135 = sbr.rel (%p132_p3) target bundleno = 143 (0x8f), region = 28 }
   0xe   : > { %v199_v0 = vld [vmem:[%s462_s1] sm:$0xf]  ;;  %v388_v1 = vmov 0   ;;  %s475_s10 = smov (!%p159_p5, %s374_s10), 1  ;;  %s477_s9 = smov (!%p161_p6, %s370_s9), 1  ;;  %vm176_vm0 = vcmask 1043456  }
   0xf   : > { %345 = vset.pattern.permute.xlu0 %v388_v1  ;;  %s298_s18 = sshll.u32 %s475_s10, 1 }
  0x10   : > { %202 = vperm.xlu0 %345, %v199_v0   ;;  %s437_s19 = sadd.s32 %s298_s18, %s477_s9 }
  0x11   : > { %s299_s20 = sshll.u32 %s437_s19, 2 }
  0x12   : > { %s166_s23 = scalar_lea.vmem %s461_s0, %s299_s20  ;;  %s174_s26 = scalar_lea.vmem %s463_s2, %s299_s20 }
  0x13   : > { %v175_v2 = vld [vmem:[%s166_s23] sm:$0xf] }
  0x14   : > { %v177_v3 = vsel %vm176_vm0, %v175_v2, 0.0 }
  0x15   : > { %v178_v4 = vrot.slane %v177_v3, 4 }
  0x17   : > { %v179_v5 = vadd.f32 %v178_v4, %v177_v3 }
  0x19   : > { %v180_v6 = vrot.slane %v179_v5, 2 }
  0x1b   : > { %v181_v7 = vadd.f32 %v180_v6, %v179_v5 }
  0x1d   : > { %v182_v8 = vrot.slane %v181_v7, 1 }
  0x1f   : > { %v183_v9 = vadd.f32 %v182_v8, %v181_v7 }
  0x21   : > { %v185_v10 = vmul.f32 0.25, %v183_v9 }
  0x23   : > { %v186_v11 = vsub.f32 %v175_v2, %v185_v10 }
  0x25   : > { %v187_v12 = vmul.f32 %v186_v11, %v186_v11 }
  0x27   : > { %v188_v13 = vsel %vm176_vm0, %v187_v12, 0.0 }
  0x28   : > { %v189_v14 = vrot.slane %v188_v13, 4 }
  0x2a   : > { %v190_v15 = vadd.f32 %v189_v14, %v188_v13 }
  0x2c   : > { %v191_v16 = vrot.slane %v190_v15, 2 }
  0x2e   : > { %v192_v17 = vadd.f32 %v191_v16, %v190_v15 }
  0x30   : > { %v193_v18 = vrot.slane %v192_v17, 1 }
  0x32   : > { %v194_v19 = vadd.f32 %v193_v18, %v192_v17 }
  0x34   : > { %v195_v20 = vmul.f32 0.25, %v194_v19 }
  0x36   : > { %v196_v21 = vadd.f32 1e-05, %v195_v20 }
  0x38   : > { %346 = vrsqrt.f32 %v196_v21 }
  0x45   : > { %v347_v22 = vpop.eup %346 }
  0x46   : > { %v198_v23 = vmul.f32 %v347_v22, %v175_v2 }
  0x8b   : > { %v203_v24 = vpop.permute.xlu0 %202 }
  0x8c   : > { %v205_v25 = vmul.f32 %v203_v24, %v198_v23 }
  0x8e   : > { %206 = vst [vmem:[%s174_s26] sm:$0xf] %v205_v25 }
  0x8f PF: > { %s12_s13 = sadd.s32 1, %s386_s13   ;;  %s464_s9 = smov %s378_s11 }
  0x90   : > { %p9_p7 = scmp.ge.s32.totalorder %s12_s13, 6   ;;  %s465_s10 = smov %s382_s12 }
  0x91   : > { %s466_s11 = smov %s469_s14  ;;  %s467_s12 = smov %s473_s15 }
  0x92   :  { %11 = sbr.rel (!%p9_p7) target bundleno = 3 (0x3), region = 58 }

</bundles_post_ra>
